<compile_context>
chip_gen: v5e
topology: v5e:2x2
jax: 0.10.0
libtpu: 0.0.40
codegen_flags: <defaults>
</compile_context>

<pallas_src>
import functools

import jax
import jax.numpy as jnp
from jax.experimental import pallas as pl
from jax.experimental.pallas import tpu as pltpu

LANE = 128


def _round_up(x, m):
    return ((x + m - 1) // m) * m


def _fused_kernel(ids_ref, emb_ref, w1_ref, b1_ref, w2_ref, b2_ref, o_ref,
                  *, batch, vocab_size):
    # ids_ref: VMEM [L*B, 1] int32, l-major (row l*B + b == token_ids[b, l])
    # emb_ref: VMEM [Vp, E]    bf16 (rows >= V are zero)
    # w1_ref : VMEM [L, E, Hp] bf16     b1_ref: VMEM [1, Hp] f32
    # w2_ref : VMEM [Hp, Cp]   bf16     b2_ref: VMEM [1, Cp] f32
    # o_ref  : VMEM [B, Cp] f32 (lane-dense store; [:, :C] sliced outside)
    n, _ = ids_ref.shape
    vp, _ = emb_ref.shape
    num_pos = w1_ref.shape[0]          # L
    hp = w1_ref.shape[2]
    b = batch

    # ---- Embedding gather on the MXU (one-hot matmul) --------------------
    ids = jnp.clip(ids_ref[...], 0, vocab_size - 1)             # [N, 1]
    iota = jax.lax.broadcasted_iota(jnp.int32, (n, vp), 1)      # [N, Vp]
    onehot = (iota == ids).astype(emb_ref.dtype)                # [N, Vp] bf16
    x = jnp.dot(onehot, emb_ref[...],
                preferred_element_type=jnp.float32)             # [N, E] f32

    # ---- lin1 + bias + ReLU: L-step accumulation over token positions ----
    # (equivalent to flatten([B, L, E]) @ w1[L*E, Hp], but every slice is
    #  sublane-aligned and no relayout/reshape is needed)
    h = jnp.zeros((b, hp), jnp.float32)
    for l in range(num_pos):                                    # static unroll
        x_l = x[l * b:(l + 1) * b, :].astype(w1_ref.dtype)      # [B, E] bf16
        h += jnp.dot(x_l, w1_ref[l], preferred_element_type=jnp.float32)
    h = jnp.maximum(h + b1_ref[...], 0.0)

    # TODO(synk): dropout is identity at inference; training-mode dropout
    # (pltpu.prng_seed + pltpu.prng_random_bits mask) intentionally omitted.

    # ---- lin2 + bias (padded hidden/output lanes are exactly zero) --------
    out = jnp.dot(h.astype(w2_ref.dtype), w2_ref[...],
                  preferred_element_type=jnp.float32)
    o_ref[...] = (out + b2_ref[...]).astype(o_ref.dtype)


def init_dense_classifier(emb_table, w1, b1, w2, b2):
    """Pad to 128-lane widths and cast weights to bf16 ONCE at model init.

    emb_table [V, E]; w1 [L*E, H]; b1 [H]; w2 [H, C]; b2 [C]
    (linear weights stored [in, out], i.e. nn.Linear.weight.T).
    Returns the padded parameter tuple consumed by dense_classifier_forward.
    """
    V, E = emb_table.shape
    in_dim, H = w1.shape
    C = w2.shape[1]
    L = in_dim // E
    assert in_dim == L * E

    Vp = _round_up(V, LANE)
    Hp = _round_up(H, LANE)
    Cp = _round_up(C, LANE)

    emb_p = jnp.zeros((Vp, E), jnp.bfloat16).at[:V, :].set(
        emb_table.astype(jnp.bfloat16))
    w1_p = jnp.zeros((L, E, Hp), jnp.bfloat16).at[:, :, :H].set(
        w1.reshape(L, E, H).astype(jnp.bfloat16))
    b1_p = jnp.zeros((1, Hp), jnp.float32).at[0, :H].set(b1.astype(jnp.float32))
    w2_p = jnp.zeros((Hp, Cp), jnp.bfloat16).at[:H, :C].set(
        w2.astype(jnp.bfloat16))
    b2_p = jnp.zeros((1, Cp), jnp.float32).at[0, :C].set(b2.astype(jnp.float32))
    return emb_p, w1_p, b1_p, w2_p, b2_p


@functools.partial(jax.jit, static_argnums=(2, 3))
def dense_classifier_forward(token_ids, params, vocab_size, num_classes):
    """token_ids [B, L] int -> logits [B, num_classes] f32."""
    emb_p, w1_p, b1_p, w2_p, b2_p = params
    B, L = token_ids.shape
    Cp = w2_p.shape[1]

    # l-major flat ids so each token position's batch rows form a contiguous
    # sublane-aligned slice inside the kernel.
    ids = jnp.transpose(token_ids).reshape(L * B, 1).astype(jnp.int32)

    out_pad = pl.pallas_call(
        functools.partial(_fused_kernel, batch=B, vocab_size=vocab_size),
        out_shape=jax.ShapeDtypeStruct((B, Cp), jnp.float32),
        in_specs=[pl.BlockSpec(memory_space=pltpu.MemorySpace.VMEM)
                  for _ in range(6)],
        out_specs=pl.BlockSpec(memory_space=pltpu.MemorySpace.VMEM),
    )(ids, emb_p, w1_p, b1_p, w2_p, b2_p)

    # TODO(synk): when batch B scales up, tile it with a grid
    # (dimension_semantics=("parallel",), weight index_maps -> constant block)
    # sized against v7x's 64 MiB VMEM so its second TensorCore takes half the
    # batch; v6e can simply use larger tiles / raise vmem_limit_bytes.
    return out_pad[:, :num_classes]


if __name__ == "__main__":
    # Small, self-consistent shapes:
    #   vocab=100, embedding_size=32, input_length=8, hidden=32, classes=4, batch=8
    V, E, L, H, C, B = 100, 32, 8, 32, 4, 8

    key = jax.random.PRNGKey(0)
    k_emb, k_w1, k_b1, k_w2, k_b2, k_x = jax.random.split(key, 6)

    # Deterministic synthetic parameters (stand-in for word2vec weights).
    emb_table = jax.random.normal(k_emb, (V, E), dtype=jnp.float32)

    # PyTorch-Linear-style uniform init U(-1/sqrt(fan_in), 1/sqrt(fan_in)),
    # stored as [in, out] (i.e. transposed vs nn.Linear.weight).
    lim1 = 1.0 / jnp.sqrt(jnp.float32(L * E))
    w1 = jax.random.uniform(k_w1, (L * E, H), jnp.float32, -lim1, lim1)
    b1 = jax.random.uniform(k_b1, (H,), jnp.float32, -lim1, lim1)

    lim2 = 1.0 / jnp.sqrt(jnp.float32(H))
    w2 = jax.random.uniform(k_w2, (H, C), jnp.float32, -lim2, lim2)
    b2 = jax.random.uniform(k_b2, (C,), jnp.float32, -lim2, lim2)

    token_ids = jax.random.randint(k_x, (B, L), 0, V, dtype=jnp.int32)

    # Padding / bf16 cast done once, outside the per-call forward path.
    params = init_dense_classifier(emb_table, w1, b1, w2, b2)

    logits = dense_classifier_forward(token_ids, params, V, C)
    jax.block_until_ready(logits)

    # Reference in plain JAX, using the same bf16-rounded weights (f32 math).
    emb_p, w1_p, b1_p, w2_p, b2_p = params
    emb_f = emb_p[:V, :].astype(jnp.float32)
    w1_f = w1_p[:, :, :H].reshape(L * E, H).astype(jnp.float32)
    w2_f = w2_p[:H, :C].astype(jnp.float32)
    hi = jax.lax.Precision.HIGHEST
    x_flat = jnp.take(emb_f, token_ids, axis=0).reshape(B, L * E)
    h_ref = jnp.maximum(jnp.dot(x_flat, w1_f, precision=hi) + b1, 0.0)
    ref = jnp.dot(h_ref, w2_f, precision=hi) + b2

    assert logits.shape == (B, C)
    max_err = float(jnp.max(jnp.abs(logits - ref)))
    assert jnp.allclose(logits, ref, atol=1e-2, rtol=1e-2), max_err

    print("KERNEL_OK")
</pallas_src>

<mosaic_0001>
module attributes {stable_mosaic.version = 11 : i64} {
  func.func @_fused_kernel(%arg0: memref<64x1xi32, #tpu.memory_space<vmem>>, %arg1: memref<128x32xbf16, #tpu.memory_space<vmem>>, %arg2: memref<8x32x128xbf16, #tpu.memory_space<vmem>>, %arg3: memref<1x128xf32, #tpu.memory_space<vmem>>, %arg4: memref<128x128xbf16, #tpu.memory_space<vmem>>, %arg5: memref<1x128xf32, #tpu.memory_space<vmem>>, %arg6: memref<8x128xf32, #tpu.memory_space<vmem>>) attributes {dimension_semantics = [], scalar_prefetch = 0 : i64, scratch_operands = 0 : i64, tpu.core_type = #tpu.core_type<tc>} {
    %c0 = arith.constant 0 : index
    %c0_0 = arith.constant 0 : index
    %0 = vector.load %arg0[%c0, %c0_0] : memref<64x1xi32, #tpu.memory_space<vmem>>, vector<64x1xi32>
    %c0_i32 = arith.constant 0 : i32
    %c99_i32 = arith.constant 99 : i32
    %1 = vector.broadcast %c0_i32 : i32 to vector<64x1xi32>
    %2 = arith.maxsi %1, %0 : vector<64x1xi32>
    %3 = vector.broadcast %c99_i32 : i32 to vector<64x1xi32>
    %4 = arith.minsi %3, %2 : vector<64x1xi32>
    %5 = tpu.iota {dimensions = array<i32: 1>} : vector<64x128xi32>
    %6 = vector.broadcast %4 : vector<64x1xi32> to vector<64x128xi32>
    %7 = arith.cmpi eq, %5, %6 : vector<64x128xi32>
    %8 = arith.extui %7 : vector<64x128xi1> to vector<64x128xi32>
    %9 = arith.sitofp %8 : vector<64x128xi32> to vector<64x128xf32>
    %10 = arith.truncf %9 : vector<64x128xf32> to vector<64x128xbf16>
    %c0_1 = arith.constant 0 : index
    %c0_2 = arith.constant 0 : index
    %11 = vector.load %arg1[%c0_1, %c0_2] : memref<128x32xbf16, #tpu.memory_space<vmem>>, vector<128x32xbf16>
    %cst = arith.constant dense<0.000000e+00> : vector<64x32xf32>
    %12 = tpu.matmul %10, %11, %cst {dimension_numbers = #tpu.dot_dimension_numbers<[1], [0], [0], [1], [0, 0, 1, 1], [], []>} : vector<64x128xbf16>, vector<128x32xbf16>, vector<64x32xf32> -> vector<64x32xf32>
    %cst_3 = arith.constant 0.000000e+00 : f32
    %13 = vector.broadcast %cst_3 : f32 to vector<8x128xf32>
    %14 = vector.extract_strided_slice %12 {offsets = [0, 0], sizes = [8, 32], strides = [1, 1]} : vector<64x32xf32> to vector<8x32xf32>
    %15 = arith.truncf %14 : vector<8x32xf32> to vector<8x32xbf16>
    %c0_4 = arith.constant 0 : index
    %c0_5 = arith.constant 0 : index
    %c0_6 = arith.constant 0 : index
    %16 = vector.load %arg2[%c0_4, %c0_5, %c0_6] : memref<8x32x128xbf16, #tpu.memory_space<vmem>>, vector<1x32x128xbf16>
    %17 = vector.shape_cast %16 : vector<1x32x128xbf16> to vector<32x128xbf16>
    %cst_7 = arith.constant dense<0.000000e+00> : vector<8x128xf32>
    %18 = tpu.matmul %15, %17, %cst_7 {dimension_numbers = #tpu.dot_dimension_numbers<[1], [0], [0], [1], [0, 0, 1, 1], [], []>} : vector<8x32xbf16>, vector<32x128xbf16>, vector<8x128xf32> -> vector<8x128xf32>
    %19 = arith.addf %13, %18 : vector<8x128xf32>
    %20 = vector.extract_strided_slice %12 {offsets = [8, 0], sizes = [8, 32], strides = [1, 1]} : vector<64x32xf32> to vector<8x32xf32>
    %21 = arith.truncf %20 : vector<8x32xf32> to vector<8x32xbf16>
    %c1 = arith.constant 1 : index
    %c0_8 = arith.constant 0 : index
    %c0_9 = arith.constant 0 : index
    %22 = vector.load %arg2[%c1, %c0_8, %c0_9] : memref<8x32x128xbf16, #tpu.memory_space<vmem>>, vector<1x32x128xbf16>
    %23 = vector.shape_cast %22 : vector<1x32x128xbf16> to vector<32x128xbf16>
    %cst_10 = arith.constant dense<0.000000e+00> : vector<8x128xf32>
    %24 = tpu.matmul %21, %23, %cst_10 {dimension_numbers = #tpu.dot_dimension_numbers<[1], [0], [0], [1], [0, 0, 1, 1], [], []>} : vector<8x32xbf16>, vector<32x128xbf16>, vector<8x128xf32> -> vector<8x128xf32>
    %25 = arith.addf %19, %24 : vector<8x128xf32>
    %26 = vector.extract_strided_slice %12 {offsets = [16, 0], sizes = [8, 32], strides = [1, 1]} : vector<64x32xf32> to vector<8x32xf32>
    %27 = arith.truncf %26 : vector<8x32xf32> to vector<8x32xbf16>
    %c2 = arith.constant 2 : index
    %c0_11 = arith.constant 0 : index
    %c0_12 = arith.constant 0 : index
    %28 = vector.load %arg2[%c2, %c0_11, %c0_12] : memref<8x32x128xbf16, #tpu.memory_space<vmem>>, vector<1x32x128xbf16>
    %29 = vector.shape_cast %28 : vector<1x32x128xbf16> to vector<32x128xbf16>
    %cst_13 = arith.constant dense<0.000000e+00> : vector<8x128xf32>
    %30 = tpu.matmul %27, %29, %cst_13 {dimension_numbers = #tpu.dot_dimension_numbers<[1], [0], [0], [1], [0, 0, 1, 1], [], []>} : vector<8x32xbf16>, vector<32x128xbf16>, vector<8x128xf32> -> vector<8x128xf32>
    %31 = arith.addf %25, %30 : vector<8x128xf32>
    %32 = vector.extract_strided_slice %12 {offsets = [24, 0], sizes = [8, 32], strides = [1, 1]} : vector<64x32xf32> to vector<8x32xf32>
    %33 = arith.truncf %32 : vector<8x32xf32> to vector<8x32xbf16>
    %c3 = arith.constant 3 : index
    %c0_14 = arith.constant 0 : index
    %c0_15 = arith.constant 0 : index
    %34 = vector.load %arg2[%c3, %c0_14, %c0_15] : memref<8x32x128xbf16, #tpu.memory_space<vmem>>, vector<1x32x128xbf16>
    %35 = vector.shape_cast %34 : vector<1x32x128xbf16> to vector<32x128xbf16>
    %cst_16 = arith.constant dense<0.000000e+00> : vector<8x128xf32>
    %36 = tpu.matmul %33, %35, %cst_16 {dimension_numbers = #tpu.dot_dimension_numbers<[1], [0], [0], [1], [0, 0, 1, 1], [], []>} : vector<8x32xbf16>, vector<32x128xbf16>, vector<8x128xf32> -> vector<8x128xf32>
    %37 = arith.addf %31, %36 : vector<8x128xf32>
    %38 = vector.extract_strided_slice %12 {offsets = [32, 0], sizes = [8, 32], strides = [1, 1]} : vector<64x32xf32> to vector<8x32xf32>
    %39 = arith.truncf %38 : vector<8x32xf32> to vector<8x32xbf16>
    %c4 = arith.constant 4 : index
    %c0_17 = arith.constant 0 : index
    %c0_18 = arith.constant 0 : index
    %40 = vector.load %arg2[%c4, %c0_17, %c0_18] : memref<8x32x128xbf16, #tpu.memory_space<vmem>>, vector<1x32x128xbf16>
    %41 = vector.shape_cast %40 : vector<1x32x128xbf16> to vector<32x128xbf16>
    %cst_19 = arith.constant dense<0.000000e+00> : vector<8x128xf32>
    %42 = tpu.matmul %39, %41, %cst_19 {dimension_numbers = #tpu.dot_dimension_numbers<[1], [0], [0], [1], [0, 0, 1, 1], [], []>} : vector<8x32xbf16>, vector<32x128xbf16>, vector<8x128xf32> -> vector<8x128xf32>
    %43 = arith.addf %37, %42 : vector<8x128xf32>
    %44 = vector.extract_strided_slice %12 {offsets = [40, 0], sizes = [8, 32], strides = [1, 1]} : vector<64x32xf32> to vector<8x32xf32>
    %45 = arith.truncf %44 : vector<8x32xf32> to vector<8x32xbf16>
    %c5 = arith.constant 5 : index
    %c0_20 = arith.constant 0 : index
    %c0_21 = arith.constant 0 : index
    %46 = vector.load %arg2[%c5, %c0_20, %c0_21] : memref<8x32x128xbf16, #tpu.memory_space<vmem>>, vector<1x32x128xbf16>
    %47 = vector.shape_cast %46 : vector<1x32x128xbf16> to vector<32x128xbf16>
    %cst_22 = arith.constant dense<0.000000e+00> : vector<8x128xf32>
    %48 = tpu.matmul %45, %47, %cst_22 {dimension_numbers = #tpu.dot_dimension_numbers<[1], [0], [0], [1], [0, 0, 1, 1], [], []>} : vector<8x32xbf16>, vector<32x128xbf16>, vector<8x128xf32> -> vector<8x128xf32>
    %49 = arith.addf %43, %48 : vector<8x128xf32>
    %50 = vector.extract_strided_slice %12 {offsets = [48, 0], sizes = [8, 32], strides = [1, 1]} : vector<64x32xf32> to vector<8x32xf32>
    %51 = arith.truncf %50 : vector<8x32xf32> to vector<8x32xbf16>
    %c6 = arith.constant 6 : index
    %c0_23 = arith.constant 0 : index
    %c0_24 = arith.constant 0 : index
    %52 = vector.load %arg2[%c6, %c0_23, %c0_24] : memref<8x32x128xbf16, #tpu.memory_space<vmem>>, vector<1x32x128xbf16>
    %53 = vector.shape_cast %52 : vector<1x32x128xbf16> to vector<32x128xbf16>
    %cst_25 = arith.constant dense<0.000000e+00> : vector<8x128xf32>
    %54 = tpu.matmul %51, %53, %cst_25 {dimension_numbers = #tpu.dot_dimension_numbers<[1], [0], [0], [1], [0, 0, 1, 1], [], []>} : vector<8x32xbf16>, vector<32x128xbf16>, vector<8x128xf32> -> vector<8x128xf32>
    %55 = arith.addf %49, %54 : vector<8x128xf32>
    %56 = vector.extract_strided_slice %12 {offsets = [56, 0], sizes = [8, 32], strides = [1, 1]} : vector<64x32xf32> to vector<8x32xf32>
    %57 = arith.truncf %56 : vector<8x32xf32> to vector<8x32xbf16>
    %c7 = arith.constant 7 : index
    %c0_26 = arith.constant 0 : index
    %c0_27 = arith.constant 0 : index
    %58 = vector.load %arg2[%c7, %c0_26, %c0_27] : memref<8x32x128xbf16, #tpu.memory_space<vmem>>, vector<1x32x128xbf16>
    %59 = vector.shape_cast %58 : vector<1x32x128xbf16> to vector<32x128xbf16>
    %cst_28 = arith.constant dense<0.000000e+00> : vector<8x128xf32>
    %60 = tpu.matmul %57, %59, %cst_28 {dimension_numbers = #tpu.dot_dimension_numbers<[1], [0], [0], [1], [0, 0, 1, 1], [], []>} : vector<8x32xbf16>, vector<32x128xbf16>, vector<8x128xf32> -> vector<8x128xf32>
    %61 = arith.addf %55, %60 : vector<8x128xf32>
    %c0_29 = arith.constant 0 : index
    %c0_30 = arith.constant 0 : index
    %62 = vector.load %arg3[%c0_29, %c0_30] : memref<1x128xf32, #tpu.memory_space<vmem>>, vector<1x128xf32>
    %63 = vector.broadcast %62 : vector<1x128xf32> to vector<8x128xf32>
    %64 = arith.addf %61, %63 : vector<8x128xf32>
    %cst_31 = arith.constant 0.000000e+00 : f32
    %65 = vector.broadcast %cst_31 : f32 to vector<8x128xf32>
    %66 = arith.maximumf %64, %65 : vector<8x128xf32>
    %67 = arith.truncf %66 : vector<8x128xf32> to vector<8x128xbf16>
    %c0_32 = arith.constant 0 : index
    %c0_33 = arith.constant 0 : index
    %68 = vector.load %arg4[%c0_32, %c0_33] : memref<128x128xbf16, #tpu.memory_space<vmem>>, vector<128x128xbf16>
    %cst_34 = arith.constant dense<0.000000e+00> : vector<8x128xf32>
    %69 = tpu.matmul %67, %68, %cst_34 {dimension_numbers = #tpu.dot_dimension_numbers<[1], [0], [0], [1], [0, 0, 1, 1], [], []>} : vector<8x128xbf16>, vector<128x128xbf16>, vector<8x128xf32> -> vector<8x128xf32>
    %c0_35 = arith.constant 0 : index
    %c0_36 = arith.constant 0 : index
    %70 = vector.load %arg5[%c0_35, %c0_36] : memref<1x128xf32, #tpu.memory_space<vmem>>, vector<1x128xf32>
    %71 = vector.broadcast %70 : vector<1x128xf32> to vector<8x128xf32>
    %72 = arith.addf %69, %71 : vector<8x128xf32>
    %c0_37 = arith.constant 0 : index
    %c0_38 = arith.constant 0 : index
    %73 = vector.load %arg6[%c0_37, %c0_38] : memref<8x128xf32, #tpu.memory_space<vmem>>, vector<8x128xf32>
    tpu.vector_store %arg6[%c0_37, %c0_38], %72 {strides = array<i32>} : memref<8x128xf32, #tpu.memory_space<vmem>>, vector<8x128xf32>,
    return
  }
}

</mosaic_0001>

<bundles_post_ra>
// kernel: dense_classifier_forward.1
= control target key start
LH: loop header
LB: loop body
LE: loop exit
PB: predicated region body
PF: predicated region fallthrough
CT: control target
= control target key end

     0   :  { %11 = vsyncpa [#allocation3], 0  ;;  %s847_s24 = smov [#allocation2]   ;;  %s848_s26 = smov 64   ;;  %s1003_s0 = inlined_call_operand.vmem [shape: s32[64,1], index: 0, kind: input, shape index: {}]   ;;  %s1004_s1 = inlined_call_operand.vmem [shape: bf16[128,32], index: 1, kind: input, shape index: {}]   ;;  %s1005_s2 = inlined_call_operand.vmem [shape: bf16[8,32,128], index: 2, kind: input, shape index: {}]   ;;  %s1006_s3 = inlined_call_operand.vmem [shape: f32[1,128], index: 3, kind: input, shape index: {}]   ;;  %s1007_s4 = inlined_call_operand.hbm [shape: bf16[128,128], index: 4, kind: input, shape index: {}]   ;;  %s1008_s5 = inlined_call_operand.vmem [shape: f32[1,128], index: 5, kind: input, shape index: {}]   ;;  %s1009_s6 = inlined_call_operand.vmem [shape: f32[8,128], index: 6, kind: output, shape index: {}]  }
   0x1   :  { %s24_s23 = sshll.u32 %s1007_s4, 4  ;;  %s26_s25 = sshll.u32 %s847_s24, 4  ;;  %s25_s23 = int_to_ptr.hbm [resolvable:$true] %s24_s23  ;;  %s27_s25 = int_to_ptr.vmem [resolvable:$true] %s26_s25 }
   0x2   :  { %s849_s27 = smov 4  }
   0x3   :  { %32 = dma.hbm_to_vmem [thread:$0]  %s25_s23, 1024, %s27_s25, [#allocation3], %s848_s26, %s848_s26, %s849_s27  }
   0x4   :  { %845 = dma.done.wait [#allocation3], 1024  }
   0x5   :  { %846 = vsyncadd [#allocation3], 4294966272  ;;  %v850_v0 = vmov 0   ;;  %v42_v1 = vld [vmem:[%s1003_s0 + $0x10] sm:$0xff]  ;;  %v40_v2 = vld [vmem:[%s1003_s0] sm:$0xff]  ;;  %v80_v34 = vlaneseq }
   0x6   :  { %817 = vset.pattern.permute.xlu1 %v850_v0  ;;  %816 = vset.pattern.permute.xlu0 %v850_v0  ;;  %v43_v3 = vld [vmem:[%s1003_s0 + $0x18] sm:$0xff]  ;;  %vm52_vm0 = vcmp.gt.s32.totalorder %v42_v1, 0  ;;  %vm48_vm1 = vcmp.gt.s32.totalorder %v40_v2, 0  ;;  %v41_v4 = vld [vmem:[%s1003_s0 + $0x8] sm:$0xff]  ;;  %v44_v7 = vld [vmem:[%s1003_s0 + $0x20] sm:$0xff] }
   0x7   :  { %818 = vset.pattern.permute.xlu2 %v850_v0  ;;  %vm54_vm2 = vcmp.gt.s32.totalorder %v43_v3, 0  ;;  %v53_v5 = vsel %vm52_vm0, %v42_v1, 0  ;;  %v49_v6 = vsel %vm48_vm1, %v40_v2, 0  ;;  %vm50_vm3 = vcmp.gt.s32.totalorder %v41_v4, 0  ;;  %v45_v8 = vld [vmem:[%s1003_s0 + $0x28] sm:$0xff]  ;;  %v786_v9 = vld [vmem:[%s1004_s1 + $0x38] sm:$0xff] }
   0x8   :  { %vm68_vm4 = vcmp.lt.s32.totalorder %v53_v5, 99  ;;  %vm64_vm5 = vcmp.lt.s32.totalorder %v49_v6, 99  ;;  %v55_v12 = vsel %vm54_vm2, %v43_v3, 0  ;;  %v51_v13 = vsel %vm50_vm3, %v41_v4, 0  ;;  %v47_v14 = vld [vmem:[%s1003_s0 + $0x38] sm:$0xff]  ;;  %v46_v15 = vld [vmem:[%s1003_s0 + $0x30] sm:$0xff]  ;;  %198 = vmatpush.bf16.msra.mxu0 %v786_v9 }
   0x9   :  { %v69_v10 = vsel %vm68_vm4, %v53_v5, 99  ;;  %v65_v11 = vsel %vm64_vm5, %v49_v6, 99  ;;  %vm56_vm6 = vcmp.gt.s32.totalorder %v44_v7, 0  ;;  %vm58_vm7 = vcmp.gt.s32.totalorder %v45_v8, 0  ;;  %v785_v17 = vld [vmem:[%s1004_s1 + $0x30] sm:$0xff]  ;;  %v784_v22 = vld [vmem:[%s1004_s1 + $0x28] sm:$0xff] }
   0xa   :  { %89 = vperm.xlu1 %817, %v69_v10   ;;  %83 = vperm.xlu0 %816, %v65_v11   ;;  %v57_v16 = vsel %vm56_vm6, %v44_v7, 0  ;;  %vm70_vm8 = vcmp.lt.s32.totalorder %v55_v12, 99  ;;  %vm66_vm9 = vcmp.lt.s32.totalorder %v51_v13, 99  ;;  %v59_v19 = vsel %vm58_vm7, %v45_v8, 0  ;;  %v783_v26 = vld [vmem:[%s1004_s1 + $0x20] sm:$0xff]  ;;  %v782_v29 = vld [vmem:[%s1004_s1 + $0x18] sm:$0xff] }
   0xb   :  { %vm72_vm10 = vcmp.lt.s32.totalorder %v57_v16, 99  ;;  %vm62_vm11 = vcmp.gt.s32.totalorder %v47_v14, 0  ;;  %vm60_vm12 = vcmp.gt.s32.totalorder %v46_v15, 0  ;;  %v71_v20 = vsel %vm70_vm8, %v55_v12, 99  ;;  %v781_v30 = vld [vmem:[%s1004_s1 + $0x10] sm:$0xff]  ;;  %v780_v31 = vld [vmem:[%s1004_s1 + $0x8] sm:$0xff] }
   0xc   :  { %v73_v18 = vsel %vm72_vm10, %v57_v16, 99  ;;  %v67_v21 = vsel %vm66_vm9, %v51_v13, 99  ;;  %199 = vmatpush.bf16.msra.mxu0 %v785_v17  ;;  %vm74_vm13 = vcmp.lt.s32.totalorder %v59_v19, 99  ;;  %v63_v23 = vsel %vm62_vm11, %v47_v14, 0  ;;  %v779_v32 = vld [vmem:[%s1004_s1] sm:$0xff]  ;;  %v788_v41 = vld [vmem:[%s1005_s2 + $0x8] sm:$0xff] }
   0xd   :  { %95 = vperm.xlu2 %818, %v73_v18   ;;  %v61_v24 = vsel %vm60_vm12, %v46_v15, 0  ;;  %v75_v25 = vsel %vm74_vm13, %v59_v19, 99  ;;  %vm78_vm14 = vcmp.lt.s32.totalorder %v63_v23, 99  ;;  %v81_v35 = vand.u32 127, %v80_v34  ;;  %288 = vmatpush.bf16.msra.mxu2 %v788_v41  ;;  %v787_v45 = vld [vmem:[%s1005_s2] sm:$0xff]  ;;  %v790_v46 = vld [vmem:[%s1005_s2 + $0x18] sm:$0xff] }
   0xe   :  { %vm76_vm15 = vcmp.lt.s32.totalorder %v61_v24, 99  ;;  %v79_v27 = vsel %vm78_vm14, %v63_v23, 99  ;;  %v851_v37 = vmov 1.0|1.0   ;;  %260 = vmatpush.bf16.msra.mxu1 %v790_v46  ;;  %v789_v47 = vld [vmem:[%s1005_s2 + $0x10] sm:$0xff]  ;;  %v792_v48 = vld [vmem:[%s1005_s2 + $0x28] sm:$0xff] }
   0xf   :  { %v77_v28 = vsel %vm76_vm15, %v61_v24, 99  ;;  %322 = vmatpush.bf16.msra.mxu3 %v792_v48  ;;  %v791_v49 = vld [vmem:[%s1005_s2 + $0x20] sm:$0xff]  ;;  %v794_v50 = vld [vmem:[%s1005_s2 + $0x38] sm:$0xff]  ;;  %v793_v51 = vld [vmem:[%s1005_s2 + $0x30] sm:$0xff]  ;;  %vm250_vm12 = vcmask 261120  }
  0x10   :  { %200 = vmatpush.bf16.msra.mxu0 %v784_v22  ;;  %v796_v52 = vld [vmem:[%s1005_s2 + $0x48] sm:$0xff]  ;;  %v795_v53 = vld [vmem:[%s1005_s2 + $0x40] sm:$0xff]  ;;  %v798_v56 = vld [vmem:[%s1005_s2 + $0x58] sm:$0xff] }
  0x11   :  { %289 = vmatpush.bf16.msra.mxu2 %v787_v45  ;;  %v797_v57 = vld [vmem:[%s1005_s2 + $0x50] sm:$0xff]  ;;  %v800_v60 = vld [vmem:[%s1005_s2 + $0x68] sm:$0xff]  ;;  %v802_v61 = vld [vmem:[%s1005_s2 + $0x78] sm:$0xff] }
  0x12   :  { %92 = vperm.xlu1 %817, %v71_v20   ;;  %86 = vperm.xlu0 %816, %v67_v21   ;;  %v799_v62 = vld [vmem:[%s1005_s2 + $0x60] sm:$0xff]  ;;  %v801_v1 = vld [vmem:[%s1005_s2 + $0x70] sm:$0xff]  ;;  %v810_v13 = vld [vmem:[#allocation2 + $0x38] sm:$0xff] }
  0x13   :  { %261 = vmatpush.bf16.msra.mxu1 %v789_v47  ;;  %323 = vmatpush.bf16.msra.mxu3 %v791_v49  ;;  %v809_v15 = vld [vmem:[#allocation2 + $0x30] sm:$0xff]  ;;  %v808_v17 = vld [vmem:[#allocation2 + $0x28] sm:$0xff]  ;;  %v807_v19 = vld [vmem:[#allocation2 + $0x20] sm:$0xff] }
  0x14   :  { %201 = vmatpush.bf16.msra.mxu0 %v783_v26  ;;  %v806_v21 = vld [vmem:[#allocation2 + $0x18] sm:$0xff]  ;;  %v805_v23 = vld [vmem:[#allocation2 + $0x10] sm:$0xff]  ;;  %v820_v47 = vld [vmem:[%s1008_s5] ss:$0 sm:$0xff] }
  0x15   :  { %98 = vperm.xlu2 %818, %v75_v25   ;;  %392 = vmatpush.bf16.msrb.mxu2 %v796_v52  ;;  %v804_v25 = vld [vmem:[#allocation2 + $0x8] sm:$0xff] }
  0x17   :  { %357 = vmatpush.bf16.msrb.mxu1 %v794_v50  ;;  %427 = vmatpush.bf16.msrb.mxu3 %v798_v56 }
  0x18   :  { %202 = vmatpush.bf16.msra.mxu0 %v782_v29 }
  0x19   :  { %393 = vmatpush.bf16.msrb.mxu2 %v795_v53 }
  0x1a   :  { %104 = vperm.xlu1 %817, %v79_v27   ;;  %101 = vperm.xlu0 %816, %v77_v28   ;;  %v803_v27 = vld [vmem:[#allocation2] sm:$0xff] }
  0x1b   :  { %358 = vmatpush.bf16.msrb.mxu1 %v793_v51  ;;  %428 = vmatpush.bf16.msrb.mxu3 %v797_v57 }
  0x1c   :  { %203 = vmatpush.bf16.msra.mxu0 %v781_v30 }
  0x20   :  { %204 = vmatpush.bf16.msra.mxu0 %v780_v31 }
  0x24   :  { %205 = vmatpush.bf16.msra.mxu0 %v779_v32 }
  0x67   :  { %v96_v40 = vpop.permute.xlu2 %95 }
  0x68   :  { %vm110_vm6 = vcmp.eq.s32.totalorder %v81_v35, %v96_v40  ;;  %v819_v40 = vld [vmem:[%s1006_s3] ss:$0 sm:$0xff] }
  0x6f   :  { %v99_v42 = vpop.permute.xlu2 %98 }
  0x70   :  { %vm111_vm7 = vcmp.eq.s32.totalorder %v81_v35, %v99_v42 }
  0x71   :  { %vm643_vm8 = vmpackc.low %vm111_vm7, %vm110_vm6 }
  0x7c   :  { %v84_v33 = vpop.permute.xlu0 %83  ;;  %v90_v38 = vpop.permute.xlu1 %89 }
  0x7d   :  { %vm106_vm1 = vcmp.eq.s32.totalorder %v81_v35, %v84_v33  ;;  %vm108_vm3 = vcmp.eq.s32.totalorder %v81_v35, %v90_v38 }
  0x84   :  { %v87_v36 = vpop.permute.xlu0 %86  ;;  %v93_v39 = vpop.permute.xlu1 %92 }
  0x85   :  { %vm107_vm0 = vcmp.eq.s32.totalorder %v81_v35, %v87_v36  ;;  %vm109_vm4 = vcmp.eq.s32.totalorder %v81_v35, %v93_v39 }
  0x86   :  { %vm639_vm2 = vmpackc.low %vm107_vm0, %vm106_vm1 }
  0x87   :  { %640 = vmatmul.msk.bf16.vlgmr.msra.gmra.mxu0 %vm639_vm2, %v851_v37  ;;  %vm641_vm5 = vmpackc.low %vm109_vm4, %vm108_vm3 }
  0x8c   :  { %v105_v43 = vpop.permute.xlu1 %104  ;;  %v102_v44 = vpop.permute.xlu0 %101 }
  0x8d   :  { %vm113_vm9 = vcmp.eq.s32.totalorder %v81_v35, %v105_v43  ;;  %vm112_vm10 = vcmp.eq.s32.totalorder %v81_v35, %v102_v44 }
  0x8e   :  { %vm645_vm11 = vmpackc.low %vm113_vm9, %vm112_vm10 }
  0x97   :  { %642 = vmatmul.msk.bf16.gmra.mxu0 %vm641_vm5, %v851_v37 }
  0xa7   :  { %644 = vmatmul.msk.bf16.gmra.mxu0 %vm643_vm8, %v851_v37 }
  0xb7   :  { %646 = vmatmul.msk.bf16.gmra.mxu0 %vm645_vm11, %v851_v37 }
 0x104   :  { %v207_v54 = vpop.f32.mrf.mxu0 }
 0x105   :  { %v227_v55 = vpack.c.bf16 %v207_v54, %v207_v54 }
 0x107   :  { %668 = vmatmul.msk.bf16.vlgmr.msra.gmra.mxu2 %vm250_vm12, %v227_v55 }
 0x108   :  { %497 = vmatpush.bf16.msra.mxu2 %v802_v61 }
 0x10c   :  { %v209_v58 = vpop.f32.mrf.mxu0  ;;  %498 = vmatpush.bf16.msra.mxu2 %v801_v1 }
 0x10d   :  { %v232_v59 = vpack.c.bf16 %v209_v58, %v209_v58 }
 0x10f   :  { %659 = vmatmul.msk.bf16.vlgmr.msra.gmra.mxu1 %vm250_vm12, %v232_v59 }
 0x110   :  { %462 = vmatpush.bf16.msra.mxu1 %v800_v60 }
 0x114   :  { %v212_v63 = vpop.f32.mrf.mxu0  ;;  %463 = vmatpush.bf16.msra.mxu1 %v799_v62 }
 0x115   :  { %v295_v0 = vpack.c.bf16 %v212_v63, %v212_v63 }
 0x117   :  { %681 = vmatmul.msk.bf16.vlgmr.msra.gmra.mxu3 %vm250_vm12, %v295_v0 }
 0x118   :  { %580 = vmatpush.bf16.msra.mxu3 %v810_v13 }
 0x11c   :  { %v214_v2 = vpop.f32.mrf.mxu0  ;;  %581 = vmatpush.bf16.msra.mxu3 %v809_v15 }
 0x11d   :  { %v330_v3 = vpack.c.bf16 %v214_v2, %v214_v2 }
 0x11f   :  { %694 = vmatmul.msk.bf16.vlgmr.msrb.gmra.mxu1 %vm250_vm12, %v330_v3 }
 0x120   :  { %582 = vmatpush.bf16.msra.mxu3 %v808_v17 }
 0x124   :  { %v217_v4 = vpop.f32.mrf.mxu0  ;;  %583 = vmatpush.bf16.msra.mxu3 %v807_v19 }
 0x125   :  { %v365_v5 = vpack.c.bf16 %v217_v4, %v217_v4 }
 0x127   :  { %707 = vmatmul.msk.bf16.vlgmr.msrb.gmra.mxu2 %vm250_vm12, %v365_v5 }
 0x128   :  { %584 = vmatpush.bf16.msra.mxu3 %v806_v21 }
 0x12c   :  { %v219_v6 = vpop.f32.mrf.mxu0  ;;  %585 = vmatpush.bf16.msra.mxu3 %v805_v23 }
 0x12d   :  { %v400_v7 = vpack.c.bf16 %v219_v6, %v219_v6 }
 0x12f   :  { %720 = vmatmul.msk.bf16.vlgmr.msrb.gmra.mxu3 %vm250_vm12, %v400_v7 }
 0x130   :  { %586 = vmatpush.bf16.msra.mxu3 %v804_v25 }
 0x134   :  { %v222_v8 = vpop.f32.mrf.mxu0  ;;  %587 = vmatpush.bf16.msra.mxu3 %v803_v27 }
 0x135   :  { %v435_v9 = vpack.c.bf16 %v222_v8, %v222_v8 }
 0x137   :  { %733 = vmatmul.msk.bf16.vlgmr.msra.gmra.mxu1 %vm250_vm12, %v435_v9 }
 0x13c   :  { %v224_v10 = vpop.f32.mrf.mxu0 }
 0x13d   :  { %v470_v11 = vpack.c.bf16 %v224_v10, %v224_v10 }
 0x13f   :  { %746 = vmatmul.msk.bf16.vlgmr.msra.gmra.mxu2 %vm250_vm12, %v470_v11 }
 0x18a   :  { %v291_v12 = vpop.f32.mrf.mxu2 }
 0x18c   :  { %v263_v14 = vpop.f32.mrf.mxu1 }
 0x18d   :  { %v292_v31 = vadd.f32 %v291_v12, %v263_v14 }
 0x192   :  { %v293_v16 = vpop.f32.mrf.mxu2 }
 0x194   :  { %v265_v18 = vpop.f32.mrf.mxu1 }
 0x19a   :  { %v325_v20 = vpop.f32.mrf.mxu3 }
 0x19b   :  { %v329_v33 = vadd.f32 %v325_v20, %v292_v31 }
 0x19c   :  { %v360_v22 = vpop.f32.mrf.mxu1 }
 0x19d   :  { %v364_v34 = vadd.f32 %v360_v22, %v329_v33 }
 0x1a2   :  { %v327_v24 = vpop.f32.mrf.mxu3 }
 0x1a4   :  { %v362_v26 = vpop.f32.mrf.mxu1 }
 0x1aa   :  { %v395_v28 = vpop.f32.mrf.mxu2 }
 0x1ab   :  { %v399_v36 = vadd.f32 %v395_v28, %v364_v34 }
 0x1b2   :  { %v397_v29 = vpop.f32.mrf.mxu2  ;;  %v430_v30 = vpop.f32.mrf.mxu3 }
 0x1b3   :  { %v434_v38 = vadd.f32 %v430_v30, %v399_v36 }
 0x1b4   :  { %v465_v32 = vpop.f32.mrf.mxu1 }
 0x1b5   :  { %v469_v39 = vadd.f32 %v465_v32, %v434_v38 }
 0x1ba   :  { %v432_v35 = vpop.f32.mrf.mxu3 }
 0x1bc   :  { %v467_v37 = vpop.f32.mrf.mxu1 }
 0x1c2   :  { %v500_v41 = vpop.f32.mrf.mxu2 }
 0x1c3   :  { %v504_v42 = vadd.f32 %v500_v41, %v469_v39 }
 0x1c5   :  { %v509_v43 = vadd.f32 %v819_v40, %v504_v42 }
 0x1c7   :  { %v510_v44 = vmax.f32 %v509_v43, 0.0 }
 0x1c9   :  { %v511_v45 = vpack.c.bf16 %v510_v44, %v510_v44 }
 0x1ca   :  { %v502_v46 = vpop.f32.mrf.mxu2 }
 0x1cb   :  { %588 = vmatmul.bf16.vlgmr.msra.gmra.mxu3 %v511_v45 }
 0x24e   :  { %v589_v48 = vpop.f32.mrf.mxu3 }
 0x24f   :  { %v590_v49 = vadd.f32 %v820_v47, %v589_v48 }
 0x251   :  { %593 = vst [vmem:[%s1009_s6] sm:$0xff] %v590_v49 }
 0x256   :  { %v591_v50 = vpop.f32.mrf.mxu3 }
 0x257   :  { %598 = vsyncpa [#allocation3], 1 }

</bundles_post_ra>
